<compile_context>
chip_gen: v7x
topology: tpu7x:2x2x1
jax: 0.10.0
libtpu: 0.0.40
codegen_flags: <defaults>
</compile_context>

<pallas_src>
import functools

import jax
import jax.numpy as jnp
from jax.experimental import pallas as pl
from jax.experimental.pallas import tpu as pltpu


def _round_up(n, m):
    return ((n + m - 1) // m) * m


def dueling_kernel(x_ref, w1_ref, b1_ref, w2_ref, b2_ref, out_ref, *, n_out, inv_bn):
    """Fused dueling head.

    x_ref  : [B, I]        raw input (no padding)
    w1_ref : [I, 2H]       [fc_value.W | fc_adv.W] fused along the output dim
    b1_ref : [1, 2H]       [bv1 | ba1]
    w2_ref : [2H, Npad]    block-diagonal: lanes 0..O-1 <- adv head, lane O <- value head
    b2_ref : [1, Npad]     lanes 0..O-1 <- ba2, lane O <- bv2, rest zero
    out_ref: [B, Npad]     lane-dense output slab; wrapper slices [:, :n_out]
    """
    x = x_ref[...]

    # One MXU pass for BOTH hidden branches, one bias add, one ReLU.
    h = jnp.dot(x, w1_ref[...], preferred_element_type=jnp.float32) + b1_ref[...]
    h = jnp.maximum(h, 0.0)                                           # [B, 2H]

    # One MXU pass for BOTH heads (block-diagonal packed weight, 128-lane output).
    head = jnp.dot(h, w2_ref[...], preferred_element_type=jnp.float32) + b2_ref[...]

    value = head[:, n_out:n_out + 1]                                  # [B, 1]

    # Global mean over the REAL advantage block (torch .mean(): scalar mean over
    # the whole [B, O] adv tensor).  Padded lanes of head are exactly 0 (zero
    # weights AND zero bias), so no mask is needed: total sum minus the value
    # column is the adv sum.  inv_bn = 1/(B*O) is a compile-time constant.
    adv_sum = jnp.sum(head) - jnp.sum(value)
    adv_mean = adv_sum * inv_bn

    # q = value + adv - adv_mean; adv lives at lanes 0..n_out-1 of `head`.
    # Write the whole lane-dense slab; the wrapper takes the lane-0-aligned slice.
    out_ref[...] = value + head - adv_mean


def fuse_params(params, lane_pad=128):
    """Fold the 4 Linear layers into 2 fused, lane-padded matmul operands."""
    wv1, bv1, wa1, ba1, wv2, bv2, wa2, ba2 = params
    H = wv1.shape[1]
    O = wa2.shape[1]
    npad = _round_up(O + 1, lane_pad)

    w1 = jnp.concatenate([wv1, wa1], axis=1)             # [I, 2H]
    b1 = jnp.concatenate([bv1, ba1], axis=1)             # [1, 2H]

    w2 = jnp.zeros((2 * H, npad), jnp.float32)
    w2 = w2.at[H:, 0:O].set(wa2)                          # adv head   -> lanes 0..O-1
    w2 = w2.at[:H, O:O + 1].set(wv2)                      # value head -> lane O

    b2 = jnp.zeros((1, npad), jnp.float32)
    b2 = b2.at[:, 0:O].set(ba2)
    b2 = b2.at[:, O:O + 1].set(bv2)

    return (w1, b1, w2, b2, O)


def dueling_forward(x, fused_params):
    w1, b1, w2, b2, n_out = fused_params
    B, I = x.shape
    H2 = w1.shape[1]
    npad = w2.shape[1]

    flops = 2 * B * I * H2 + 2 * B * H2 * npad
    bytes_accessed = 4 * (B * I + I * H2 + H2 + H2 * npad + npad + B * npad)

    def vmem_spec():
        return pl.BlockSpec(memory_space=pltpu.MemorySpace.VMEM)

    out = pl.pallas_call(
        functools.partial(dueling_kernel, n_out=n_out,
                          inv_bn=1.0 / float(B * n_out)),
        out_shape=jax.ShapeDtypeStruct((B, npad), jnp.float32),
        in_specs=[vmem_spec() for _ in range(5)],
        out_specs=vmem_spec(),
        cost_estimate=pl.CostEstimate(flops=flops, transcendentals=0,
                                      bytes_accessed=bytes_accessed),
    )(x, w1, b1, w2, b2)

    # adv (the Q-values) occupies lanes 0..n_out-1 -> lane-0-aligned free slice.
    return out[:, :n_out]


def init_params(key, input_size, hidden_size, output_size):
    """Deterministic init mimicking torch.nn.Linear default (uniform +-1/sqrt(fan_in)).
    Weights stored transposed: [in_features, out_features]."""
    ks = jax.random.split(key, 8)

    def linear(kw, kb, fan_in, fan_out):
        bound = 1.0 / jnp.sqrt(jnp.float32(fan_in))
        w = jax.random.uniform(kw, (fan_in, fan_out), jnp.float32, -bound, bound)
        b = jax.random.uniform(kb, (1, fan_out), jnp.float32, -bound, bound)
        return w, b

    wv1, bv1 = linear(ks[0], ks[1], input_size, hidden_size)    # fc_value
    wa1, ba1 = linear(ks[2], ks[3], input_size, hidden_size)    # fc_adv
    wv2, bv2 = linear(ks[4], ks[5], hidden_size, 1)             # value
    wa2, ba2 = linear(ks[6], ks[7], hidden_size, output_size)   # adv
    return (wv1, bv1, wa1, ba1, wv2, bv2, wa2, ba2)


def reference_forward(x, params):
    """Pure-JAX reference matching the PyTorch module semantics."""
    wv1, bv1, wa1, ba1, wv2, bv2, wa2, ba2 = params
    value = jax.nn.relu(x @ wv1 + bv1)
    adv = jax.nn.relu(x @ wa1 + ba1)
    value = value @ wv2 + bv2
    adv = adv @ wa2 + ba2
    return value + adv - adv.mean()


if __name__ == "__main__":
    key = jax.random.PRNGKey(0)
    k_x, k_p = jax.random.split(key)

    batch, input_size, hidden_size, output_size = 2, 16, 32, 4
    x = jax.random.normal(k_x, (batch, input_size), jnp.float32)
    params = init_params(k_p, input_size, hidden_size, output_size)

    fused = fuse_params(params)           # one-time weight fusion (init-time cost)
    out = dueling_forward(x, fused)
    out = jax.block_until_ready(out)

    ref = reference_forward(x, params)
    assert out.shape == (batch, output_size), out.shape
    assert jnp.allclose(out, ref, atol=1e-4, rtol=1e-4), (out, ref)

    print("KERNEL_OK")
</pallas_src>

<mosaic_0001>
module attributes {stable_mosaic.version = 11 : i64} {
  func.func @dueling_kernel(%arg0: memref<2x16xf32, #tpu.memory_space<vmem>>, %arg1: memref<16x64xf32, #tpu.memory_space<vmem>>, %arg2: memref<1x64xf32, #tpu.memory_space<vmem>>, %arg3: memref<64x128xf32, #tpu.memory_space<vmem>>, %arg4: memref<1x128xf32, #tpu.memory_space<vmem>>, %arg5: memref<2x128xf32, #tpu.memory_space<vmem>>) attributes {dimension_semantics = [], scalar_prefetch = 0 : i64, scratch_operands = 0 : i64, tpu.core_type = #tpu.core_type<tc>} {
    %c0 = arith.constant 0 : index
    %c0_0 = arith.constant 0 : index
    %0 = vector.load %arg0[%c0, %c0_0] : memref<2x16xf32, #tpu.memory_space<vmem>>, vector<2x16xf32>
    %c0_1 = arith.constant 0 : index
    %c0_2 = arith.constant 0 : index
    %1 = vector.load %arg1[%c0_1, %c0_2] : memref<16x64xf32, #tpu.memory_space<vmem>>, vector<16x64xf32>
    %cst = arith.constant dense<0.000000e+00> : vector<2x64xf32>
    %2 = tpu.matmul %0, %1, %cst {dimension_numbers = #tpu.dot_dimension_numbers<[1], [0], [0], [1], [0, 0, 1, 1], [], []>} : vector<2x16xf32>, vector<16x64xf32>, vector<2x64xf32> -> vector<2x64xf32>
    %c0_3 = arith.constant 0 : index
    %c0_4 = arith.constant 0 : index
    %3 = vector.load %arg2[%c0_3, %c0_4] : memref<1x64xf32, #tpu.memory_space<vmem>>, vector<1x64xf32>
    %4 = vector.broadcast %3 : vector<1x64xf32> to vector<2x64xf32>
    %5 = arith.addf %2, %4 : vector<2x64xf32>
    %cst_5 = arith.constant 0.000000e+00 : f32
    %6 = vector.broadcast %cst_5 : f32 to vector<2x64xf32>
    %7 = arith.maximumf %5, %6 : vector<2x64xf32>
    %c0_6 = arith.constant 0 : index
    %c0_7 = arith.constant 0 : index
    %8 = vector.load %arg3[%c0_6, %c0_7] : memref<64x128xf32, #tpu.memory_space<vmem>>, vector<64x128xf32>
    %cst_8 = arith.constant dense<0.000000e+00> : vector<2x128xf32>
    %9 = tpu.matmul %7, %8, %cst_8 {dimension_numbers = #tpu.dot_dimension_numbers<[1], [0], [0], [1], [0, 0, 1, 1], [], []>} : vector<2x64xf32>, vector<64x128xf32>, vector<2x128xf32> -> vector<2x128xf32>
    %c0_9 = arith.constant 0 : index
    %c0_10 = arith.constant 0 : index
    %10 = vector.load %arg4[%c0_9, %c0_10] : memref<1x128xf32, #tpu.memory_space<vmem>>, vector<1x128xf32>
    %11 = vector.broadcast %10 : vector<1x128xf32> to vector<2x128xf32>
    %12 = arith.addf %9, %11 : vector<2x128xf32>
    %13 = vector.extract_strided_slice %12 {offsets = [0, 4], sizes = [2, 1], strides = [1, 1]} : vector<2x128xf32> to vector<2x1xf32>
    %14 = vector.shape_cast %12 : vector<2x128xf32> to vector<1x2x128xf32>
    %cst_11 = arith.constant dense<0.000000e+00> : vector<1xf32>
    %15 = vector.multi_reduction <add>, %14, %cst_11 [1, 2] : vector<1x2x128xf32> to vector<1xf32>
    %16 = vector.shape_cast %15 : vector<1xf32> to vector<1x1x1xf32>
    %17 = vector.extract %16[0, 0, 0] : f32 from vector<1x1x1xf32>
    %18 = vector.shape_cast %13 : vector<2x1xf32> to vector<1x2x1xf32>
    %cst_12 = arith.constant dense<0.000000e+00> : vector<1xf32>
    %19 = vector.multi_reduction <add>, %18, %cst_12 [1, 2] : vector<1x2x1xf32> to vector<1xf32>
    %20 = vector.shape_cast %19 : vector<1xf32> to vector<1x1x1xf32>
    %21 = vector.extract %20[0, 0, 0] : f32 from vector<1x1x1xf32>
    %22 = arith.subf %17, %21 : f32
    %cst_13 = arith.constant 1.250000e-01 : f32
    %23 = arith.mulf %22, %cst_13 : f32
    %24 = vector.broadcast %13 : vector<2x1xf32> to vector<2x128xf32>
    %25 = arith.addf %24, %12 : vector<2x128xf32>
    %26 = vector.broadcast %23 : f32 to vector<2x128xf32>
    %27 = arith.subf %25, %26 : vector<2x128xf32>
    %c0_14 = arith.constant 0 : index
    %c0_15 = arith.constant 0 : index
    %28 = vector.load %arg5[%c0_14, %c0_15] : memref<2x128xf32, #tpu.memory_space<vmem>>, vector<2x128xf32>
    tpu.vector_store %arg5[%c0_14, %c0_15], %27 {strides = array<i32>} : memref<2x128xf32, #tpu.memory_space<vmem>>, vector<2x128xf32>,
    return
  }
}

</mosaic_0001>

<bundles_post_ra>
// kernel: tpu_custom_call.1
= control target key start
LH: loop header
LB: loop body
LE: loop exit
PB: predicated region body
PF: predicated region fallthrough
CT: control target
= control target key end

     0   :  { %10 = vsyncpa [#allocation3], 0  ;;  %s555_s0 = inlined_call_operand.hbm [shape: f32[2,16], index: 0, kind: input, shape index: {}]   ;;  %s556_s1 = inlined_call_operand.hbm [shape: f32[16,64], index: 1, kind: input, shape index: {}]   ;;  %s557_s2 = inlined_call_operand.vmem [shape: f32[1,64], index: 2, kind: input, shape index: {}]   ;;  %s558_s3 = inlined_call_operand.hbm [shape: f32[64,128], index: 3, kind: input, shape index: {}]   ;;  %s559_s4 = inlined_call_operand.vmem [shape: f32[1,128], index: 4, kind: input, shape index: {}]   ;;  %s560_s5 = inlined_call_operand.hbm [shape: f32[2,128], index: 5, kind: output, shape index: {}]  }
   0x1   :  { %11 = vsyncpa [#allocation6], 0 }
   0x2   :  { %12 = vsyncpa [#allocation4], 0  ;;  %s454_s18 = smov [#allocation5]   ;;  %s360_s22 = scalar_lea.hbm %s556_s1, 256 }
   0x3   :  { %s28_s19 = sshll.u32 %s454_s18, 4  ;;  %p361_p0 = scmp.ne.s32.totalorder %s556_s1, %s360_s22  ;;  %s29_s19 = int_to_ptr.vmem [resolvable:$true] %s28_s19 }
   0x4   :  { %p364_p1 = scmp.lt.u32.totalorder %s360_s22, %s556_s1 }
   0x6   :  { %p366_p2 = pnand %p364_p1, %p361_p0 }
   0x8   :  { %369 = shalt.err (!%p366_p2)
}
   0x9   :  { %s370_s27 = scalar_lea.vmem %s29_s19, 256  ;;  %p375_p4 = scmp.lt.s32.totalorder %s29_s19, %s29_s19 }
   0xa   :  { %p371_p3 = scmp.ne.s32.totalorder %s29_s19, %s370_s27  ;;  %p376_p5 = scmp.lt.s32.totalorder %s370_s27, %s370_s27 }
   0xc   :  { %p377_p6 = por %p376_p5, %p375_p4 }
   0xe   :  { %p378_p7 = pnand %p377_p6, %p371_p3 }
  0x10   :  { %381 = shalt.err (!%p378_p7)
}
  0x11   :  { %s455_s28 = smov 128   ;;  %s456_s29 = smov 8  }
  0x12   :  { %34 = dma.hbm_to_vmem [thread:$0]  %s556_s1, 256, %s29_s19, [#allocation6], %s455_s28, %s455_s28, %s456_s29  }
  0x13   :  { %s457_s7 = smov [#allocation2]   ;;  %s458_s9 = smov [#allocation7]  }
  0x14   :  { %s19_s8 = sshll.u32 %s457_s7, 4  ;;  %s42_s10 = sshll.u32 %s458_s9, 4  ;;  %s20_s8 = int_to_ptr.vmem [resolvable:$true] %s19_s8  ;;  %s43_s10 = int_to_ptr.vmem [resolvable:$true] %s42_s10 }
  0x15   :  { %s382_s13 = scalar_lea.hbm %s555_s0, 32 }
  0x16   :  { %p383_p8 = scmp.ne.s32.totalorder %s555_s0, %s382_s13  ;;  %p386_p9 = scmp.lt.u32.totalorder %s382_s13, %s555_s0 }
  0x18   :  { %p388_p10 = pnand %p386_p9, %p383_p8 }
  0x1a   :  { %391 = shalt.err (!%p388_p10)
}
  0x1b   :  { %s392_s1 = scalar_lea.vmem %s20_s8, 32  ;;  %p397_p12 = scmp.lt.s32.totalorder %s20_s8, %s20_s8 }
  0x1c   :  { %p393_p11 = scmp.ne.s32.totalorder %s20_s8, %s392_s1  ;;  %p398_p13 = scmp.lt.s32.totalorder %s392_s1, %s392_s1 }
  0x1e   :  { %p399_p0 = por %p398_p13, %p397_p12 }
  0x20   :  { %p400_p1 = pnand %p399_p0, %p393_p11 }
  0x22   :  { %403 = shalt.err (!%p400_p1)
}
  0x23   :  { %22 = dma.hbm_to_vmem [thread:$0]  %s555_s0, 32, %s20_s8, [#allocation3]  }
  0x24   :  { %s404_s22 = scalar_lea.hbm %s558_s3, 1024 }
  0x25   :  { %p405_p2 = scmp.ne.s32.totalorder %s558_s3, %s404_s22  ;;  %p408_p3 = scmp.lt.u32.totalorder %s404_s22, %s558_s3 }
  0x27   :  { %p410_p4 = pnand %p408_p3, %p405_p2 }
  0x29   :  { %413 = shalt.err (!%p410_p4)
}
  0x2a   :  { %s414_s27 = scalar_lea.vmem %s43_s10, 1024  ;;  %p419_p6 = scmp.lt.s32.totalorder %s43_s10, %s43_s10 }
  0x2b   :  { %p415_p5 = scmp.ne.s32.totalorder %s43_s10, %s414_s27  ;;  %p420_p7 = scmp.lt.s32.totalorder %s414_s27, %s414_s27 }
  0x2d   :  { %p421_p8 = por %p420_p7, %p419_p6 }
  0x2f   :  { %p422_p9 = pnand %p421_p8, %p415_p5 }
  0x31   :  { %425 = shalt.err (!%p422_p9)
}
  0x32   :  { %48 = dma.hbm_to_vmem [thread:$0]  %s558_s3, 1024, %s43_s10, [#allocation6], %s455_s28, %s455_s28, %s456_s29  }
  0x33   :  { %448 = dma.done.wait [#allocation3], 32  }
  0x34   :  { %449 = vsyncadd [#allocation3], 4294967264 }
  0x35   :  { %450 = dma.done.wait [#allocation6], 1280  }
  0x36   :  { %451 = vsyncadd [#allocation6], 4294966016  ;;  %v459_v0 = vmov 0.0|0.0   ;;  %vm460_vm0 = vmmov 0   ;;  %v461_v1 = vmov 0.0   ;;  %v61_v2 = vld [vmem:[#allocation5] sm:$0xff] }
  0x37   :  { %328 = vmatprep.subr.bf16.mxu0 %v459_v0  ;;  %306 = vmatprep.mubr.msk.f32.mxu0 %vm460_vm0, %v461_v1  ;;  %v62_v3 = vld [vmem:[#allocation5 + $0x8] sm:$0xff]  ;;  %v145_v5 = vld [vmem:[#allocation7] sm:$0xff]  ;;  %v146_v6 = vld [vmem:[#allocation7 + $0x8] sm:$0xff]  ;;  %vm70_vm1 = vcmask 130048   ;;  %vm160_vm2 = vcmask 523264   ;;  %v462_v23 = vmov 4  }
  0x38   :  { %331 = vmatprep.subr.bf16.mxu1 %v459_v0  ;;  %325 = vmatprep.mubr.msk.f32.mxu1 %vm460_vm0, %v461_v1  ;;  %v329_v4 = vpack.c.bf16 %v62_v3, %v61_v2  ;;  %v147_v7 = vld [vmem:[#allocation7 + $0x10] sm:$0xff]  ;;  %v332_v8 = vpack.c.bf16 %v146_v6, %v145_v5  ;;  %v148_v9 = vld [vmem:[#allocation7 + $0x18] sm:$0xff]  ;;  %v60_v10 = vld [vmem:[#allocation2] sm:$0x3]  ;;  %s463_s7 = smov 124   ;;  %vm234_vm3 = vcmask 1041408  }
  0x39   :  { %v335_v11 = vpack.c.bf16 %v148_v9, %v147_v7  ;;  %v149_v12 = vld [vmem:[#allocation7 + $0x20] sm:$0xff]  ;;  %v150_v13 = vld [vmem:[#allocation7 + $0x28] sm:$0xff]  ;;  %v151_v15 = vld [vmem:[#allocation7 + $0x30] sm:$0xff]  ;;  %358 = vset.pattern.permute.xlu1 %v462_v23  ;;  %359 = vset.pattern.permute.xlu0 %v462_v23  ;;  %vm249_vm4 = vcmask 1024   ;;  %s464_s10 = smov [#allocation8]  }
  0x3a   :  { %330 = vmatpush3.bf16.msra.mxu0 %v329_v4  ;;  %333 = vmatpush3.bf16.msra.mxu1 %v332_v8  ;;  %v338_v14 = vpack.c.bf16 %v150_v13, %v149_v12  ;;  %v152_v16 = vld [vmem:[#allocation7 + $0x38] sm:$0xff]  ;;  %v286_v18 = vld [vmem:[%s557_s2] ss:$0 sm:$0xff]  ;;  %s276_s11 = sshll.u32 %s464_s10, 4  ;;  %s277_s11 = int_to_ptr.vmem [resolvable:$true] %s276_s11 }
  0x3b   :  { %334 = vmatprep.subr.bf16.mxu1 %v459_v0  ;;  %v341_v17 = vpack.c.bf16 %v152_v16, %v151_v15  ;;  %v288_v24 = vld [vmem:[%s559_s4] ss:$0 sm:$0xff]  ;;  %s426_s12 = scalar_lea.vmem %s277_s11, 32  ;;  %p431_p11 = scmp.lt.s32.totalorder %s277_s11, %s277_s11 }
  0x3c   :  { %p427_p10 = scmp.ne.s32.totalorder %s277_s11, %s426_s12  ;;  %p432_p12 = scmp.lt.s32.totalorder %s426_s12, %s426_s12 }
  0x3d   :  { %307 = vmatmul.mubr.msk.f32.vlgmr.msra.gmra.mrb[0].mxu0 %vm70_vm1, %v60_v10 }
  0x3e   :  { %336 = vmatpush3.bf16.msra.mxu1 %v335_v11  ;;  %p433_p13 = por %p432_p12, %p431_p11 }
  0x3f   :  { %337 = vmatprep.subr.bf16.mxu1 %v459_v0 }
  0x40   :  { %p434_p0 = pnand %p433_p13, %p427_p10 }
  0x42   :  { %339 = vmatpush3.bf16.msra.mxu1 %v338_v14 }
  0x43   :  { %340 = vmatprep.subr.bf16.mxu1 %v459_v0 }
  0x46   :  { %342 = vmatpush3.bf16.msra.mxu1 %v341_v17 }
 0x110   :  { %v140_v19 = vpop.f32.mrb[0].mxu0 }
 0x111   :  { %v141_v20 = vadd.f32 %v286_v18, %v140_v19  ;;  %v308_v21 = vpop.f32.mrb[1].mxu0 }
 0x113   :  { %v144_v22 = vmax.f32 %v141_v20, 0.0 }
 0x115   :  { %326 = vmatmul.mubr.msk.f32.vlgmr.msra.gmra.mrb[0].mxu1 %vm160_vm2, %v144_v22 }
 0x1e8   :  { %v230_v25 = vpop.f32.mrb[0].mxu1 }
 0x1e9   :  { %v231_v26 = vadd.f32 %v288_v24, %v230_v25  ;;  %v327_v27 = vpop.f32.mrb[1].mxu1 }
 0x1eb   :  { %246 = vrot.lane.b32.xlu0 %v231_v26, %s463_s7  ;;  %v235_v28 = vsel %vm234_vm3, %v231_v26, 0.0 }
 0x20a   :  { %236 = vadd.xlane.f32.xlu0 %v235_v28 }
 0x25d   :  { %v247_v29 = vpop.permute.xlu0 %246 }
 0x25e   :  { %v250_v30 = vsel %vm249_vm4, %v247_v29, 0.0 }
 0x25f   :  { %251 = vadd.xlane.f32.xlu1 %v250_v30 }
 0x270   :  { %263 = vperm.xlu1 %358, %v231_v26  }
 0x297   :  { %v237_v31 = vpop.xlane.xlu0 %236 }
 0x298   :  { %v238_v32 = vrot.slane %v237_v31, 4 }
 0x29a   :  { %v239_v33 = vadd.f32 %v238_v32, %v237_v31 }
 0x29c   :  { %v240_v34 = vrot.slane %v239_v33, 2 }
 0x29e   :  { %v241_v35 = vadd.f32 %v240_v34, %v239_v33 }
 0x2a0   :  { %v242_v36 = vrot.slane %v241_v35, 1 }
 0x2a2   :  { %v243_v37 = vadd.f32 %v242_v36, %v241_v35 }
 0x2a4   :  { %343 = vpush %v243_v37 }
 0x2d5   :  { %s344_s2 = spop %343 }
 0x2ec   :  { %v252_v38 = vpop.xlane.xlu1 %251 }
 0x2ed   :  { %v253_v39 = vrot.slane %v252_v38, 4 }
 0x2ef   :  { %v254_v40 = vadd.f32 %v253_v39, %v252_v38 }
 0x2f0   :  { %v264_v45 = vpop.permute.xlu1 %263 }
 0x2f1   :  { %v255_v41 = vrot.slane %v254_v40, 2  ;;  %v266_v46 = vadd.f32 %v264_v45, %v231_v26 }
 0x2f3   :  { %v256_v42 = vadd.f32 %v255_v41, %v254_v40 }
 0x2f5   :  { %v257_v43 = vrot.slane %v256_v42, 1 }
 0x2f7   :  { %v258_v44 = vadd.f32 %v257_v43, %v256_v42 }
 0x2f9   :  { %345 = vpush %v258_v44 }
 0x32a   :  { %s346_s4 = spop %345 }
 0x32b   :  { %s260_s8 = ssub.f32 %s344_s2, %s346_s4 }
 0x32d   :  { %s261_s9 = smul.f32 0.125, %s260_s8 }
 0x32f   :  { %v267_v47 = vstv %s261_s9 }
 0x330   :  { %v268_v48 = vsub.f32 %v266_v46, %v267_v47 }
 0x332   :  { %269 = vst [vmem:[#allocation8] sm:$0x3] %v268_v48 }
 0x333   :  { %437 = shalt.err (!%p434_p0)
}
 0x334   :  { %s438_s15 = scalar_lea.hbm %s560_s5, 32 }
 0x335   :  { %p439_p1 = scmp.ne.s32.totalorder %s560_s5, %s438_s15  ;;  %p442_p2 = scmp.lt.u32.totalorder %s438_s15, %s560_s5 }
 0x337   :  { %p444_p3 = pnand %p442_p2, %p439_p1 }
 0x339   :  { %447 = shalt.err (!%p444_p3)
}
 0x33a   :  { %279 = dma.vmem_to_hbm [thread:$0]  %s277_s11, 32, %s560_s5, [#allocation4]  }
 0x33b   :  { %452 = dma.done.wait [#allocation4], 32  }
 0x33c   :  { %453 = vsyncadd [#allocation4], 4294967264 }
 0x33d   :  { %283 = vsyncpa [#allocation3], 1 }
 0x33e   :  { %284 = vsyncpa [#allocation6], 1 }
 0x33f   :  { %285 = vsyncpa [#allocation4], 1 }

</bundles_post_ra>
